<compile_context>
chip_gen: v6e
topology: v6e:2x2x1
jax: 0.10.0
libtpu: 0.0.40
codegen_flags: <defaults>
</compile_context>

<pallas_src>
import functools

import jax
import jax.numpy as jnp
import numpy as np
from jax.experimental import pallas as pl
from jax.experimental.pallas import tpu as pltpu

LN_EPS = 1e-5
BN_EPS = 1e-5


def _round_up(x, m):
    return (x + m - 1) // m * m


def _conv_module_kernel(T_total, P,
                        x_ref,      # (1, TILE_T, D)  main tile of the input
                        xp_ref,     # (1, HALO,  D)   rows just before the tile
                        xn_ref,     # (1, HALO,  D)   rows just after the tile
                        ln_g_ref,   # (1, D)          LayerNorm gamma
                        ln_b_ref,   # (1, D)          LayerNorm beta
                        w1t_ref,    # (D, 2C) bf16    pointwise conv1 weight^T
                        wd_ref,     # (K, C)  f32     depthwise weight (BN-folded)
                        dwb_ref,    # (1, C)  f32     folded BN bias
                        w2t_ref,    # (C, D)  bf16    pointwise conv2 weight^T
                        out_ref,    # (1, TILE_T, D)
                        gpad_ref):  # (TILE_T + 2*HALO, C) f32 VMEM scratch
    TILE_T = x_ref.shape[1]
    D = x_ref.shape[2]
    HALO = xp_ref.shape[1]
    K, C = wd_ref.shape
    n_rows = TILE_T + 2 * HALO
    t = pl.program_id(1)

    # Stitch prev-halo + main tile + next-halo rows into one slab (sublane
    # aligned pieces, so the concat is layout-clean).
    xs = jnp.concatenate([xp_ref[0], x_ref[0], xn_ref[0]], axis=0)  # (n_rows, D)

    # --- LayerNorm over D: single fused pass (sum & sum-of-squares) ---
    s1 = jnp.sum(xs, axis=-1, keepdims=True)
    s2 = jnp.sum(xs * xs, axis=-1, keepdims=True)
    mean = s1 * (1.0 / D)
    var = s2 * (1.0 / D) - mean * mean
    inv = jax.lax.rsqrt(jnp.maximum(var, 0.0) + LN_EPS)
    xnrm = (xs - mean) * inv * ln_g_ref[0] + ln_b_ref[0]

    # --- pointwise Conv1d(D -> 2C, k=1, no bias): bf16 MXU, f32 accumulate ---
    y = jnp.dot(xnrm.astype(jnp.bfloat16), w1t_ref[...],
                preferred_element_type=jnp.float32)               # (n_rows, 2C)

    # --- GLU over the channel dim: a * sigmoid(b) ---
    g = y[:, :C] * jax.nn.sigmoid(y[:, C:])                       # (n_rows, C)

    # Zero rows whose global index falls outside [0, T_total): this provides
    # the depthwise conv's 'SAME' zero padding and masks edge halos / T-pad.
    row = jax.lax.broadcasted_iota(jnp.int32, (n_rows, C), 0) + (t * TILE_T - HALO)
    g = jnp.where((row >= 0) & (row < T_total), g, 0.0)
    gpad_ref[...] = g

    # --- depthwise Conv1d(C->C, k=K, groups=C) with BatchNorm folded in ---
    # out[i, c] = sum_k wd[k, c] * g_pad[HALO - P + k + i, c]
    acc = jnp.zeros((TILE_T, C), jnp.float32)
    for k in range(K):                                            # K small & static
        off = HALO - P + k
        acc = acc + gpad_ref[off:off + TILE_T, :] * wd_ref[k, :]
    # TODO(synk): BatchNorm is folded in eval mode (running stats); PyTorch
    # training mode would need batch statistics over (B, T).
    z = acc + dwb_ref[0]

    # --- SiLU ---
    z = z * jax.nn.sigmoid(z)

    # --- pointwise Conv1d(C -> D, k=1, no bias); Dropout(p=0.0) is a no-op ---
    out_ref[0] = jnp.dot(z.astype(jnp.bfloat16), w2t_ref[...],
                         preferred_element_type=jnp.float32).astype(out_ref.dtype)


def convolution_module(x, params, *, tile_t=512):
    """Conformer ConvolutionModule forward (eval-mode BatchNorm).

    params (float32):
      ln_g, ln_b : (1, D)   LayerNorm weight / bias
      w1t        : (D, 2C)  Conv1d(D, 2C, 1).weight[:, :, 0].T
      wd         : (K, C)   depthwise Conv1d weight (C, 1, K) transposed to (K, C)
      bn_m/v/g/b : (1, C)   BatchNorm1d running mean/var + affine
      w2t        : (C, D)   Conv1d(C, D, 1).weight[:, :, 0].T

    `tile_t` is the sequence-tile target; ~256-512 is appropriate for v7x
    (64 MiB VMEM), larger tiles (1024+) for v5e/v6e.
    """
    B, T, D = x.shape
    K, C = params["wd"].shape
    assert (K - 1) % 2 == 0, "depthwise_kernel_size must be odd for SAME padding"
    P = (K - 1) // 2

    # ---- host-side (trace-time) parameter preparation ----------------------
    # Fold eval-mode BatchNorm into the depthwise weight and a per-channel bias.
    bn_scale = params["bn_g"][0] * jax.lax.rsqrt(params["bn_v"][0] + BN_EPS)   # (C,)
    wd_fold = (params["wd"] * bn_scale[None, :]).astype(jnp.float32)           # (K, C)
    dw_bias = (params["bn_b"][0] - params["bn_m"][0] * bn_scale)[None, :]      # (1, C)
    dw_bias = dw_bias.astype(jnp.float32)
    # bf16 operands for the MXU matmuls (accumulation stays f32 in-kernel).
    w1t = params["w1t"].astype(jnp.bfloat16)
    w2t = params["w2t"].astype(jnp.bfloat16)

    # ---- sequence tiling with a sublane-aligned halo ------------------------
    HALO = max(8, _round_up(P, 8))                 # halo rows fetched per side
    TILE_T = _round_up(min(tile_t, _round_up(T, HALO)), HALO)
    T_pad = _round_up(T, TILE_T)
    if T_pad != T:
        x = jnp.pad(x, ((0, 0), (0, T_pad - T), (0, 0)))
    num_t = T_pad // TILE_T
    R = TILE_T // HALO                             # halo blocks per main tile

    def const_spec(shape):
        return pl.BlockSpec(shape, lambda b, t, _n=len(shape): (0,) * _n)

    kernel = functools.partial(_conv_module_kernel, T, P)

    out = pl.pallas_call(
        kernel,
        out_shape=jax.ShapeDtypeStruct((B, T_pad, D), jnp.float32),
        grid=(B, num_t),
        in_specs=[
            # main tile
            pl.BlockSpec((1, TILE_T, D), lambda b, t: (b, t, 0)),
            # previous-halo rows [t*TILE_T - HALO, t*TILE_T); clamped at t==0
            # (the kernel zeroes logically-out-of-range rows).
            pl.BlockSpec((1, HALO, D),
                         lambda b, t: (b, jnp.maximum(t * R - 1, 0), 0)),
            # next-halo rows [(t+1)*TILE_T, (t+1)*TILE_T + HALO); clamped at end.
            pl.BlockSpec((1, HALO, D),
                         lambda b, t: (b, jnp.minimum((t + 1) * R,
                                                      T_pad // HALO - 1), 0)),
            const_spec((1, D)), const_spec((1, D)),     # LayerNorm gamma/beta
            const_spec((D, 2 * C)),                     # w1^T (bf16)
            const_spec((K, C)),                         # BN-folded depthwise weight
            const_spec((1, C)),                         # folded BN bias
            const_spec((C, D)),                         # w2^T (bf16)
        ],
        out_specs=pl.BlockSpec((1, TILE_T, D), lambda b, t: (b, t, 0)),
        scratch_shapes=[pltpu.VMEM((TILE_T + 2 * HALO, C), jnp.float32)],
        compiler_params=pltpu.CompilerParams(
            dimension_semantics=("parallel", "parallel"),
            vmem_limit_bytes=48 * 1024 * 1024),
    )(x, x, x, params["ln_g"], params["ln_b"], w1t, wd_fold, dw_bias, w2t)

    return out[:, :T, :] if T_pad != T else out


def reference_jax(x, params):
    """Plain-JAX (f32) replica of the PyTorch forward (BatchNorm eval mode)."""
    B, T, D = x.shape
    K, C = params["wd"].shape
    P = (K - 1) // 2
    mean = jnp.mean(x, axis=-1, keepdims=True)
    var = jnp.mean((x - mean) ** 2, axis=-1, keepdims=True)
    xn = (x - mean) * jax.lax.rsqrt(var + LN_EPS) * params["ln_g"][0] + params["ln_b"][0]
    y = jnp.einsum("btd,dc->btc", xn, params["w1t"])
    g = y[..., :C] * jax.nn.sigmoid(y[..., C:])
    gp = jnp.pad(g, ((0, 0), (P, P), (0, 0)))
    acc = jnp.zeros_like(g)
    for k in range(K):
        acc = acc + gp[:, k:k + T, :] * params["wd"][k]
    z = (acc - params["bn_m"][0]) * jax.lax.rsqrt(params["bn_v"][0] + BN_EPS)
    z = z * params["bn_g"][0] + params["bn_b"][0]
    z = z * jax.nn.sigmoid(z)
    return jnp.einsum("btc,cd->btd", z, params["w2t"])


if __name__ == "__main__":
    B, T, D = 2, 16, 32          # batch, sequence length, input_dim
    C, K = 8, 5                  # num_channels, depthwise_kernel_size (odd)
    # NOTE: real Conformer dims (D, C multiples of 128) are lane-dense; these
    # small test shapes are not representative of production layout.

    key = jax.random.PRNGKey(0)
    ks = jax.random.split(key, 10)
    f32 = jnp.float32

    params = {
        "ln_g": 1.0 + 0.1 * jax.random.normal(ks[0], (1, D), f32),
        "ln_b": 0.1 * jax.random.normal(ks[1], (1, D), f32),
        "w1t": 0.2 * jax.random.normal(ks[2], (D, 2 * C), f32),   # Conv1d(D,2C,1).weight.T
        "wd": 0.2 * jax.random.normal(ks[3], (K, C), f32),        # depthwise (C,1,K) -> (K,C)
        "bn_m": 0.1 * jax.random.normal(ks[4], (1, C), f32),
        "bn_v": jax.random.uniform(ks[5], (1, C), f32, 0.5, 1.5),
        "bn_g": 1.0 + 0.1 * jax.random.normal(ks[6], (1, C), f32),
        "bn_b": 0.1 * jax.random.normal(ks[7], (1, C), f32),
        "w2t": 0.2 * jax.random.normal(ks[8], (C, D), f32),       # Conv1d(C,D,1).weight.T
    }
    x = jax.random.normal(ks[9], (B, T, D), f32)

    out = jax.block_until_ready(convolution_module(x, params))
    ref = jax.block_until_ready(reference_jax(x, params))
    # bf16 MXU operands -> loosened tolerance vs the f32 reference.
    np.testing.assert_allclose(np.asarray(out), np.asarray(ref), rtol=2e-2, atol=2e-2)

    print("KERNEL_OK")
</pallas_src>

<mosaic_0001>
module attributes {stable_mosaic.version = 11 : i64} {
  func.func @_conv_module_kernel(%arg0: i32, %arg1: i32, %arg2: memref<1x16x32xf32, #tpu.memory_space<vmem>>, %arg3: memref<1x8x32xf32, #tpu.memory_space<vmem>>, %arg4: memref<1x8x32xf32, #tpu.memory_space<vmem>>, %arg5: memref<1x32xf32, #tpu.memory_space<vmem>>, %arg6: memref<1x32xf32, #tpu.memory_space<vmem>>, %arg7: memref<32x16xbf16, #tpu.memory_space<vmem>>, %arg8: memref<5x8xf32, #tpu.memory_space<vmem>>, %arg9: memref<1x8xf32, #tpu.memory_space<vmem>>, %arg10: memref<8x32xbf16, #tpu.memory_space<vmem>>, %arg11: memref<1x16x32xf32, #tpu.memory_space<vmem>>, %arg12: memref<32x8xf32, #tpu.memory_space<vmem>>) attributes {dimension_semantics = [#tpu.dimension_semantics<parallel>, #tpu.dimension_semantics<parallel>], iteration_bounds = array<i64: 2, 1>, scalar_prefetch = 0 : i64, scratch_operands = 1 : i64, tpu.core_type = #tpu.core_type<tc>, window_params = [{transform_indices = @transform_0, window_bounds = array<i64: 1, 16, 32>}, {transform_indices = @transform_1, window_bounds = array<i64: 1, 8, 32>}, {transform_indices = @transform_2, window_bounds = array<i64: 1, 8, 32>}, {pipeline_mode = #tpu.pipeline_mode<synchronous>, transform_indices = @transform_3, window_bounds = array<i64: 1, 32>}, {pipeline_mode = #tpu.pipeline_mode<synchronous>, transform_indices = @transform_4, window_bounds = array<i64: 1, 32>}, {pipeline_mode = #tpu.pipeline_mode<synchronous>, transform_indices = @transform_5, window_bounds = array<i64: 32, 16>}, {pipeline_mode = #tpu.pipeline_mode<synchronous>, transform_indices = @transform_6, window_bounds = array<i64: 5, 8>}, {pipeline_mode = #tpu.pipeline_mode<synchronous>, transform_indices = @transform_7, window_bounds = array<i64: 1, 8>}, {pipeline_mode = #tpu.pipeline_mode<synchronous>, transform_indices = @transform_8, window_bounds = array<i64: 8, 32>}, {transform_indices = @transform_9, window_bounds = array<i64: 1, 16, 32>}]} {
    %c0 = arith.constant 0 : index
    %c0_0 = arith.constant 0 : index
    %c0_1 = arith.constant 0 : index
    %0 = vector.load %arg3[%c0, %c0_0, %c0_1] : memref<1x8x32xf32, #tpu.memory_space<vmem>>, vector<1x8x32xf32>
    %1 = vector.shape_cast %0 : vector<1x8x32xf32> to vector<8x32xf32>
    %c0_2 = arith.constant 0 : index
    %c0_3 = arith.constant 0 : index
    %c0_4 = arith.constant 0 : index
    %2 = vector.load %arg2[%c0_2, %c0_3, %c0_4] : memref<1x16x32xf32, #tpu.memory_space<vmem>>, vector<1x16x32xf32>
    %3 = vector.shape_cast %2 : vector<1x16x32xf32> to vector<16x32xf32>
    %c0_5 = arith.constant 0 : index
    %c0_6 = arith.constant 0 : index
    %c0_7 = arith.constant 0 : index
    %4 = vector.load %arg4[%c0_5, %c0_6, %c0_7] : memref<1x8x32xf32, #tpu.memory_space<vmem>>, vector<1x8x32xf32>
    %5 = vector.shape_cast %4 : vector<1x8x32xf32> to vector<8x32xf32>
    %6 = tpu.concatenate %1, %3, %5 in 0 : vector<8x32xf32>, vector<16x32xf32>, vector<8x32xf32> -> vector<32x32xf32>
    %cst = arith.constant dense<0.000000e+00> : vector<32xf32>
    %7 = vector.multi_reduction <add>, %6, %cst [1] : vector<32x32xf32> to vector<32xf32>
    %8 = vector.shape_cast %7 : vector<32xf32> to vector<32x1xf32>
    %9 = arith.mulf %6, %6 : vector<32x32xf32>
    %cst_8 = arith.constant dense<0.000000e+00> : vector<32xf32>
    %10 = vector.multi_reduction <add>, %9, %cst_8 [1] : vector<32x32xf32> to vector<32xf32>
    %11 = vector.shape_cast %10 : vector<32xf32> to vector<32x1xf32>
    %cst_9 = arith.constant 3.125000e-02 : f32
    %12 = vector.broadcast %cst_9 : f32 to vector<32x1xf32>
    %13 = arith.mulf %8, %12 : vector<32x1xf32>
    %cst_10 = arith.constant 3.125000e-02 : f32
    %14 = vector.broadcast %cst_10 : f32 to vector<32x1xf32>
    %15 = arith.mulf %11, %14 : vector<32x1xf32>
    %16 = arith.mulf %13, %13 : vector<32x1xf32>
    %17 = arith.subf %15, %16 : vector<32x1xf32>
    %cst_11 = arith.constant 0.000000e+00 : f32
    %18 = vector.broadcast %cst_11 : f32 to vector<32x1xf32>
    %19 = arith.maximumf %17, %18 : vector<32x1xf32>
    %cst_12 = arith.constant 9.99999974E-6 : f32
    %20 = vector.broadcast %cst_12 : f32 to vector<32x1xf32>
    %21 = arith.addf %19, %20 : vector<32x1xf32>
    %22 = math.rsqrt %21 : vector<32x1xf32>
    %23 = vector.broadcast %13 : vector<32x1xf32> to vector<32x32xf32>
    %24 = arith.subf %6, %23 : vector<32x32xf32>
    %25 = vector.broadcast %22 : vector<32x1xf32> to vector<32x32xf32>
    %26 = arith.mulf %24, %25 : vector<32x32xf32>
    %c0_13 = arith.constant 0 : index
    %c0_14 = arith.constant 0 : index
    %27 = vector.load %arg5[%c0_13, %c0_14] : memref<1x32xf32, #tpu.memory_space<vmem>>, vector<1x32xf32>
    %28 = vector.shape_cast %27 : vector<1x32xf32> to vector<32xf32>
    %29 = vector.shape_cast %28 : vector<32xf32> to vector<1x32xf32>
    %30 = vector.broadcast %29 : vector<1x32xf32> to vector<32x32xf32>
    %31 = arith.mulf %26, %30 : vector<32x32xf32>
    %c0_15 = arith.constant 0 : index
    %c0_16 = arith.constant 0 : index
    %32 = vector.load %arg6[%c0_15, %c0_16] : memref<1x32xf32, #tpu.memory_space<vmem>>, vector<1x32xf32>
    %33 = vector.shape_cast %32 : vector<1x32xf32> to vector<32xf32>
    %34 = vector.shape_cast %33 : vector<32xf32> to vector<1x32xf32>
    %35 = vector.broadcast %34 : vector<1x32xf32> to vector<32x32xf32>
    %36 = arith.addf %31, %35 : vector<32x32xf32>
    %37 = arith.truncf %36 : vector<32x32xf32> to vector<32x32xbf16>
    %c0_17 = arith.constant 0 : index
    %c0_18 = arith.constant 0 : index
    %38 = vector.load %arg7[%c0_17, %c0_18] : memref<32x16xbf16, #tpu.memory_space<vmem>>, vector<32x16xbf16>
    %cst_19 = arith.constant dense<0.000000e+00> : vector<32x16xf32>
    %39 = tpu.matmul %37, %38, %cst_19 {dimension_numbers = #tpu.dot_dimension_numbers<[1], [0], [0], [1], [0, 0, 1, 1], [], []>} : vector<32x32xbf16>, vector<32x16xbf16>, vector<32x16xf32> -> vector<32x16xf32>
    %40 = vector.extract_strided_slice %39 {offsets = [0, 0], sizes = [32, 8], strides = [1, 1]} : vector<32x16xf32> to vector<32x8xf32>
    %41 = vector.extract_strided_slice %39 {offsets = [0, 8], sizes = [32, 8], strides = [1, 1]} : vector<32x16xf32> to vector<32x8xf32>
    %42 = arith.negf %41 : vector<32x8xf32>
    %43 = math.exp %42 : vector<32x8xf32>
    %cst_20 = arith.constant 1.000000e+00 : f32
    %44 = vector.broadcast %cst_20 : f32 to vector<32x8xf32>
    %45 = arith.addf %44, %43 : vector<32x8xf32>
    %46 = arith.divf %44, %45 : vector<32x8xf32>
    %47 = arith.mulf %40, %46 : vector<32x8xf32>
    %48 = tpu.iota {dimensions = array<i32: 0>} : vector<32x8xi32>
    %c16_i32 = arith.constant 16 : i32
    %49 = arith.muli %arg1, %c16_i32 : i32
    %c8_i32 = arith.constant 8 : i32
    %50 = arith.subi %49, %c8_i32 : i32
    %51 = vector.broadcast %50 : i32 to vector<32x8xi32>
    %52 = arith.addi %48, %51 : vector<32x8xi32>
    %c0_i32 = arith.constant 0 : i32
    %53 = vector.broadcast %c0_i32 : i32 to vector<32x8xi32>
    %54 = arith.cmpi sge, %52, %53 : vector<32x8xi32>
    %c16_i32_21 = arith.constant 16 : i32
    %55 = vector.broadcast %c16_i32_21 : i32 to vector<32x8xi32>
    %56 = arith.cmpi slt, %52, %55 : vector<32x8xi32>
    %57 = arith.andi %54, %56 : vector<32x8xi1>
    %cst_22 = arith.constant 0.000000e+00 : f32
    %58 = vector.broadcast %cst_22 : f32 to vector<32x8xf32>
    %59 = arith.select %57, %47, %58 : vector<32x8xi1>, vector<32x8xf32>
    %c0_23 = arith.constant 0 : index
    %c0_24 = arith.constant 0 : index
    %60 = vector.load %arg12[%c0_23, %c0_24] : memref<32x8xf32, #tpu.memory_space<vmem>>, vector<32x8xf32>
    tpu.vector_store %arg12[%c0_23, %c0_24], %59 {strides = array<i32>} : memref<32x8xf32, #tpu.memory_space<vmem>>, vector<32x8xf32>,
    %cst_25 = arith.constant 0.000000e+00 : f32
    %61 = vector.broadcast %cst_25 : f32 to vector<16x8xf32>
    %c6 = arith.constant 6 : index
    %c0_26 = arith.constant 0 : index
    %62 = vector.load %arg12[%c6, %c0_26] : memref<32x8xf32, #tpu.memory_space<vmem>>, vector<16x8xf32>
    %c0_27 = arith.constant 0 : index
    %c0_28 = arith.constant 0 : index
    %63 = vector.load %arg8[%c0_27, %c0_28] : memref<5x8xf32, #tpu.memory_space<vmem>>, vector<1x8xf32>
    %64 = vector.shape_cast %63 : vector<1x8xf32> to vector<8xf32>
    %65 = vector.shape_cast %64 : vector<8xf32> to vector<1x8xf32>
    %66 = vector.broadcast %65 : vector<1x8xf32> to vector<16x8xf32>
    %67 = arith.mulf %62, %66 : vector<16x8xf32>
    %68 = arith.addf %61, %67 : vector<16x8xf32>
    %c7 = arith.constant 7 : index
    %c0_29 = arith.constant 0 : index
    %69 = vector.load %arg12[%c7, %c0_29] : memref<32x8xf32, #tpu.memory_space<vmem>>, vector<16x8xf32>
    %c1 = arith.constant 1 : index
    %c0_30 = arith.constant 0 : index
    %70 = vector.load %arg8[%c1, %c0_30] : memref<5x8xf32, #tpu.memory_space<vmem>>, vector<1x8xf32>
    %71 = vector.shape_cast %70 : vector<1x8xf32> to vector<8xf32>
    %72 = vector.shape_cast %71 : vector<8xf32> to vector<1x8xf32>
    %73 = vector.broadcast %72 : vector<1x8xf32> to vector<16x8xf32>
    %74 = arith.mulf %69, %73 : vector<16x8xf32>
    %75 = arith.addf %68, %74 : vector<16x8xf32>
    %c8 = arith.constant 8 : index
    %c0_31 = arith.constant 0 : index
    %76 = vector.load %arg12[%c8, %c0_31] : memref<32x8xf32, #tpu.memory_space<vmem>>, vector<16x8xf32>
    %c2 = arith.constant 2 : index
    %c0_32 = arith.constant 0 : index
    %77 = vector.load %arg8[%c2, %c0_32] : memref<5x8xf32, #tpu.memory_space<vmem>>, vector<1x8xf32>
    %78 = vector.shape_cast %77 : vector<1x8xf32> to vector<8xf32>
    %79 = vector.shape_cast %78 : vector<8xf32> to vector<1x8xf32>
    %80 = vector.broadcast %79 : vector<1x8xf32> to vector<16x8xf32>
    %81 = arith.mulf %76, %80 : vector<16x8xf32>
    %82 = arith.addf %75, %81 : vector<16x8xf32>
    %c9 = arith.constant 9 : index
    %c0_33 = arith.constant 0 : index
    %83 = vector.load %arg12[%c9, %c0_33] : memref<32x8xf32, #tpu.memory_space<vmem>>, vector<16x8xf32>
    %c3 = arith.constant 3 : index
    %c0_34 = arith.constant 0 : index
    %84 = vector.load %arg8[%c3, %c0_34] : memref<5x8xf32, #tpu.memory_space<vmem>>, vector<1x8xf32>
    %85 = vector.shape_cast %84 : vector<1x8xf32> to vector<8xf32>
    %86 = vector.shape_cast %85 : vector<8xf32> to vector<1x8xf32>
    %87 = vector.broadcast %86 : vector<1x8xf32> to vector<16x8xf32>
    %88 = arith.mulf %83, %87 : vector<16x8xf32>
    %89 = arith.addf %82, %88 : vector<16x8xf32>
    %c10 = arith.constant 10 : index
    %c0_35 = arith.constant 0 : index
    %90 = vector.load %arg12[%c10, %c0_35] : memref<32x8xf32, #tpu.memory_space<vmem>>, vector<16x8xf32>
    %c4 = arith.constant 4 : index
    %c0_36 = arith.constant 0 : index
    %91 = vector.load %arg8[%c4, %c0_36] : memref<5x8xf32, #tpu.memory_space<vmem>>, vector<1x8xf32>
    %92 = vector.shape_cast %91 : vector<1x8xf32> to vector<8xf32>
    %93 = vector.shape_cast %92 : vector<8xf32> to vector<1x8xf32>
    %94 = vector.broadcast %93 : vector<1x8xf32> to vector<16x8xf32>
    %95 = arith.mulf %90, %94 : vector<16x8xf32>
    %96 = arith.addf %89, %95 : vector<16x8xf32>
    %c0_37 = arith.constant 0 : index
    %c0_38 = arith.constant 0 : index
    %97 = vector.load %arg9[%c0_37, %c0_38] : memref<1x8xf32, #tpu.memory_space<vmem>>, vector<1x8xf32>
    %98 = vector.shape_cast %97 : vector<1x8xf32> to vector<8xf32>
    %99 = vector.shape_cast %98 : vector<8xf32> to vector<1x8xf32>
    %100 = vector.broadcast %99 : vector<1x8xf32> to vector<16x8xf32>
    %101 = arith.addf %96, %100 : vector<16x8xf32>
    %102 = arith.negf %101 : vector<16x8xf32>
    %103 = math.exp %102 : vector<16x8xf32>
    %cst_39 = arith.constant 1.000000e+00 : f32
    %104 = vector.broadcast %cst_39 : f32 to vector<16x8xf32>
    %105 = arith.addf %104, %103 : vector<16x8xf32>
    %106 = arith.divf %104, %105 : vector<16x8xf32>
    %107 = arith.mulf %101, %106 : vector<16x8xf32>
    %108 = arith.truncf %107 : vector<16x8xf32> to vector<16x8xbf16>
    %c0_40 = arith.constant 0 : index
    %c0_41 = arith.constant 0 : index
    %109 = vector.load %arg10[%c0_40, %c0_41] : memref<8x32xbf16, #tpu.memory_space<vmem>>, vector<8x32xbf16>
    %cst_42 = arith.constant dense<0.000000e+00> : vector<16x32xf32>
    %110 = tpu.matmul %108, %109, %cst_42 {dimension_numbers = #tpu.dot_dimension_numbers<[1], [0], [0], [1], [0, 0, 1, 1], [], []>} : vector<16x8xbf16>, vector<8x32xbf16>, vector<16x32xf32> -> vector<16x32xf32>
    %c0_43 = arith.constant 0 : index
    %c0_44 = arith.constant 0 : index
    %c0_45 = arith.constant 0 : index
    %111 = vector.load %arg11[%c0_43, %c0_44, %c0_45] : memref<1x16x32xf32, #tpu.memory_space<vmem>>, vector<1x16x32xf32>
    %112 = vector.shape_cast %111 : vector<1x16x32xf32> to vector<16x32xf32>
    %113 = vector.shape_cast %110 : vector<16x32xf32> to vector<1x16x32xf32>
    tpu.vector_store %arg11[%c0_43, %c0_44, %c0_45], %113 {strides = array<i32>} : memref<1x16x32xf32, #tpu.memory_space<vmem>>, vector<1x16x32xf32>,
    return
  }
  func.func @transform_0(%arg0: i32, %arg1: i32) -> (i32, i32, i32) {
    %c0_i32 = arith.constant 0 : i32
    %c0_i32_0 = arith.constant 0 : i32
    return %arg0, %arg1, %c0_i32 : i32, i32, i32
  }
  func.func @transform_1(%arg0: i32, %arg1: i32) -> (i32, i32, i32) {
    %c2_i32 = arith.constant 2 : i32
    %0 = arith.muli %arg1, %c2_i32 : i32
    %c1_i32 = arith.constant 1 : i32
    %1 = arith.subi %0, %c1_i32 : i32
    %c0_i32 = arith.constant 0 : i32
    %2 = arith.maxsi %1, %c0_i32 : i32
    %c0_i32_0 = arith.constant 0 : i32
    %c0_i32_1 = arith.constant 0 : i32
    return %arg0, %2, %c0_i32_0 : i32, i32, i32
  }
  func.func @transform_2(%arg0: i32, %arg1: i32) -> (i32, i32, i32) {
    %c1_i32 = arith.constant 1 : i32
    %0 = arith.addi %arg1, %c1_i32 : i32
    %c2_i32 = arith.constant 2 : i32
    %1 = arith.muli %0, %c2_i32 : i32
    %c1_i32_0 = arith.constant 1 : i32
    %2 = arith.minsi %1, %c1_i32_0 : i32
    %c0_i32 = arith.constant 0 : i32
    %c0_i32_1 = arith.constant 0 : i32
    return %arg0, %2, %c0_i32 : i32, i32, i32
  }
  func.func @transform_3(%arg0: i32, %arg1: i32) -> (i32, i32) {
    %c0_i32 = arith.constant 0 : i32
    %c0_i32_0 = arith.constant 0 : i32
    %c0_i32_1 = arith.constant 0 : i32
    return %c0_i32, %c0_i32_0 : i32, i32
  }
  func.func @transform_4(%arg0: i32, %arg1: i32) -> (i32, i32) {
    %c0_i32 = arith.constant 0 : i32
    %c0_i32_0 = arith.constant 0 : i32
    %c0_i32_1 = arith.constant 0 : i32
    return %c0_i32, %c0_i32_0 : i32, i32
  }
  func.func @transform_5(%arg0: i32, %arg1: i32) -> (i32, i32) {
    %c0_i32 = arith.constant 0 : i32
    %c0_i32_0 = arith.constant 0 : i32
    %c0_i32_1 = arith.constant 0 : i32
    return %c0_i32, %c0_i32_0 : i32, i32
  }
  func.func @transform_6(%arg0: i32, %arg1: i32) -> (i32, i32) {
    %c0_i32 = arith.constant 0 : i32
    %c0_i32_0 = arith.constant 0 : i32
    %c0_i32_1 = arith.constant 0 : i32
    return %c0_i32, %c0_i32_0 : i32, i32
  }
  func.func @transform_7(%arg0: i32, %arg1: i32) -> (i32, i32) {
    %c0_i32 = arith.constant 0 : i32
    %c0_i32_0 = arith.constant 0 : i32
    %c0_i32_1 = arith.constant 0 : i32
    return %c0_i32, %c0_i32_0 : i32, i32
  }
  func.func @transform_8(%arg0: i32, %arg1: i32) -> (i32, i32) {
    %c0_i32 = arith.constant 0 : i32
    %c0_i32_0 = arith.constant 0 : i32
    %c0_i32_1 = arith.constant 0 : i32
    return %c0_i32, %c0_i32_0 : i32, i32
  }
  func.func @transform_9(%arg0: i32, %arg1: i32) -> (i32, i32, i32) {
    %c0_i32 = arith.constant 0 : i32
    %c0_i32_0 = arith.constant 0 : i32
    return %arg0, %arg1, %c0_i32 : i32, i32, i32
  }
}

</mosaic_0001>

<bundles_post_ra>
// kernel: tpu_custom_call.1
= control target key start
LH: loop header
LB: loop body
LE: loop exit
PB: predicated region body
PF: predicated region fallthrough
CT: control target
= control target key end

     0   :  { %s1692_s0 = inlined_call_operand.hbm [shape: f32[2,16,32], index: 0, kind: input, shape index: {}]   ;;  %s1693_s1 = inlined_call_operand.hbm [shape: f32[2,16,32], index: 1, kind: input, shape index: {}]   ;;  %s1694_s2 = inlined_call_operand.hbm [shape: f32[2,16,32], index: 2, kind: input, shape index: {}]   ;;  %s1695_s3 = inlined_call_operand.vmem [shape: f32[1,32], index: 3, kind: input, shape index: {}]   ;;  %s1696_s4 = inlined_call_operand.vmem [shape: f32[1,32], index: 4, kind: input, shape index: {}]   ;;  %s1697_s5 = inlined_call_operand.vmem [shape: bf16[32,16], index: 5, kind: input, shape index: {}]   ;;  %s1698_s6 = inlined_call_operand.vmem [shape: f32[5,8], index: 6, kind: input, shape index: {}]   ;;  %s1699_s7 = inlined_call_operand.vmem [shape: f32[1,8], index: 7, kind: input, shape index: {}]   ;;  %s1700_s8 = inlined_call_operand.vmem [shape: bf16[8,32], index: 8, kind: input, shape index: {}]   ;;  %s1701_s9 = inlined_call_operand.hbm [shape: f32[2,16,32], index: 9, kind: output, shape index: {}]  }
   0x1   :  { %1713 = sst [smem:[#allocation21_spill]] %s1693_s1 }
   0x2   :  { %1714 = sst [smem:[#allocation22_spill]] %s1694_s2 }
   0x3   :  { %1715 = sst [smem:[#allocation23_spill]] %s1701_s9 }
   0x4   :  { %14 = vsyncpa [#allocation4], 0 }
   0x5   :  { %16 = vsyncpa [#allocation4 + $0x1], 0 }
   0x6   :  { %17 = vsyncpa [#allocation7], 0 }
   0x7   :  { %19 = vsyncpa [#allocation7 + $0x1], 0 }
   0x8   :  { %20 = vsyncpa [#allocation5], 0 }
   0x9   :  { %22 = vsyncpa [#allocation5 + $0x1], 0  ;;  %s1408_s30 = smov 0   ;;  %s1410_s10 = smov 0  }
   0xa   :  { %s1412_s11 = smov 0   ;;  %s1414_s12 = smov 0  }
   0xb   :  { %s1416_s13 = smov 0   ;;  %s1418_s14 = smov 0  }
   0xc LB: > { %1716 = sst [smem:[#allocation13_spill]] %s1325_s30  ;;  %s1439_s15 = sadd.s32 4294967295, %s1345_s14   ;;  %s1345_s14 = sphi %s1418_s14, %s28_s14   ;;  %s1341_s13 = sphi %s1416_s13, %s1743_s13   ;;  %s1337_s12 = sphi %s1414_s12, %s1746_s12   ;;  %s1333_s11 = sphi %s1412_s11, %s1741_s11   ;;  %s1329_s10 = sphi %s1410_s10, %s1745_s10   ;;  %s1325_s30 = sphi %s1408_s30, %s1744_s30  }
   0xd   : > { %1717 = sst [smem:[#allocation14_spill]] %s1333_s11  ;;  %s1005_s16 = sadd.s32 4294967294, %s1345_s14  }
   0xe   : > { %1718 = sst [smem:[#allocation15_spill]] %s1341_s13  ;;  %s40_s17 = sadd.s32 1, %s1341_s13 }
   0xf   : > { %1719 = sst [smem:[#allocation16_spill]] %s1345_s14  ;;  %s49_s18 = sadd.s32 1, %s1333_s11 }
  0x10   : > { %p42_p0 = scmp.ge.s32.totalorder %s40_s17, 2  ;;  %p56_p1 = scmp.ne.s32.totalorder %s1333_s11, %s1329_s10 }
  0x11   : > { %p57_p2 = scmp.eq.s32.totalorder %s1345_s14, 0  ;;  %p62_p3 = scmp.ne.s32.totalorder %s1329_s10, %s1325_s30 }
  0x12   : > { %s1748_s17 = smov (%p42_p0, %s40_s17), 0  ;;  %p63_p5 = scmp.eq.s32.totalorder %s1439_s15, 0 }
  0x13   : > { %1720 = sst [smem:[#allocation17_spill]] %s1748_s17  ;;  %p1451_p4 = por %p57_p2, %p56_p1 }
  0x14   : > { %s44_s20 = ssub.s32 %s1341_s13, %s1748_s17  ;;  %p286_p6 = scmp.eq.s32.totalorder %s1439_s15, 1 }
  0x15   : > { %p47_p7 = scmp.eq.s32.totalorder %s44_s20, 0  ;;  %p1459_p8 = por %p63_p5, %p62_p3 }
  0x16   : > { %p1463_p9 = por %p286_p6, %p56_p1  ;;  %p292_p10 = scmp.eq.s32.totalorder %s1005_s16, 1 }
  0x17   : > { %s1468_s23 = scalar_select %p47_p7, %s1333_s11, %s49_s18  }
  0x18   : > { %s1723_s22 = scalar_select %p1463_p9, 1, 0 }
  0x19   : > { %1725 = sst [smem:[#allocation19_spill]] %s1468_s23  ;;  %p1470_p11 = por %p292_p10, %p62_p3 }
  0x1a   : > { %1724 = sst [smem:[#allocation18_spill]] %s1723_s22  ;;  %p1007_p12 = scmp.ge.s32.totalorder %s1345_s14, 2 }
  0x1b   : > { %s1726_s24 = scalar_select %p1470_p11, 1, 0 }
  0x1c   : > { %p1094_p13 = scmp.lt.s32.totalorder %s1345_s14, 2  ;;  %s1477_s25 = sand.u32 1, %s1333_s11  }
  0x1d   : > { %1727 = sst [smem:[#allocation20_spill]] %s1726_s24  ;;  %s1480_s26 = sshll.u32 %s1341_s13, 8 }
  0x1e   : > { %s353_s27 = sand.u32 1, %s1345_s14   ;;  %p1489_p0 = pnand %p1094_p13, %p1451_p4 }
  0x1f   : > { %s1707_s20 = sshll.u32 %s1477_s25, 3  ;;  %s1729_s1 = sld [smem:[#allocation21_spill]] }
  0x20   : > { %s357_s11 = scalar_lea.vmem [#allocation6], %s1707_s20  ;;  %s1500_s30 = scalar_lea.sflag [#allocation7], %s353_s27 }
  0x21   : > { %s370_s24 = sshll.u32 %s357_s11, 4  ;;  %p1179_p1 = pneg %p1489_p0  ;;  %s371_s24 = int_to_ptr.vmem [resolvable:$true] %s370_s24 }
  0x22   : > { %s1190_s19 = scalar_lea.vmem %s371_s24, 128  ;;  %s1347_s28 = smov [#allocation6]  }
  0x23   : > { %p1191_p2 = scmp.ne.s32.totalorder %s371_s24, %s1190_s19  ;;  %s1195_s29 = sshll.u32 %s1347_s28, 4  ;;  %s1196_s29 = int_to_ptr.vmem [resolvable:$false] %s1195_s29 }
  0x24   : > { %s1197_s16 = scalar_lea.vmem %s1196_s29, 256  ;;  %p1198_p5 = scmp.lt.s32.totalorder %s371_s24, %s1196_s29 }
  0x25   : > { %s368_s13 = scalar_lea.hbm %s1729_s1, %s1480_s26  ;;  %p1193_p3 = pnand %p1191_p2, %p1179_p1 }
  0x26   : > { %p1199_p6 = scmp.lt.s32.totalorder %s1197_s16, %s1190_s19 }
  0x27   : > { %p1194_p4 = pneg %p1193_p3 }
  0x28   : > { %p1200_p7 = por %p1199_p6, %p1198_p5 }
  0x2a   : > { %p1201_p10 = pnand %p1200_p7, %p1194_p4 }
  0x2c   : > { %1204 = shalt.err (!%p1201_p10)
}
  0x2d   : > { %1086 = dma.hbm_to_vmem [thread:$0]  (!%p1489_p0), %s368_s13, 128, %s371_s24, %s1500_s30  }
  0x2e   : > { %p1017_p13 = scmp.ge.s32.totalorder %s1345_s14, 1  ;;  %p399_p2 = scmp.lt.s32.totalorder %s1345_s14, 3 }
  0x2f   : > { %s1008_s17 = sshll.u32 %s1477_s25, 4  ;;  %s1049_s16 = sadd.s32 128, %s1480_s26 }
  0x30   : > { %p1512_p3 = pnand %p1017_p13, %p399_p2  ;;  %s334_s23 = scalar_lea.vmem [#allocation3], %s1008_s17 }
  0x31   : > { %s343_s27 = sshll.u32 %s334_s23, 4  ;;  %s1731_s2 = sld [smem:[#allocation22_spill]]  ;;  %s344_s27 = int_to_ptr.vmem [resolvable:$true] %s343_s27 }
  0x32   : > { %s331_s20 = scalar_lea.sflag [#allocation4], %s1477_s25  ;;  %s1218_s1 = scalar_lea.vmem %s344_s27, 256 }
  0x33   : > { %p1219_p4 = scmp.ne.s32.totalorder %s344_s27, %s1218_s1  ;;  %s1348_s13 = smov [#allocation3]  }
  0x34   : > { %s1223_s24 = sshll.u32 %s1348_s13, 4  ;;  %s1224_s24 = int_to_ptr.vmem [resolvable:$false] %s1223_s24 }
  0x35   : > { %p1221_p5 = pnand %p1219_p4, %p1179_p1  ;;  %s1225_s14 = scalar_lea.vmem %s1224_s24, 512 }
  0x36   : > { %p1226_p7 = scmp.lt.s32.totalorder %s344_s27, %s1224_s24  ;;  %p1227_p10 = scmp.lt.s32.totalorder %s1225_s14, %s1218_s1 }
  0x37   : > { %s1521_s29 = scalar_lea.hbm %s1731_s2, %s1049_s16  ;;  %p1222_p6 = pneg %p1221_p5 }
  0x38   : > { %p1228_p13 = por %p1227_p10, %p1226_p7 }
  0x3a   : > { %p1229_p2 = pnand %p1228_p13, %p1222_p6 }
  0x3c   : > { %1232 = shalt.err (!%p1229_p2)
}
  0x3d   : > { %s1349_s17 = smov 128   ;;  %s1350_s23 = smov 8  }
  0x3e   : > { %s1732_s28 = scalar_lea.hbm %s1692_s0, %s1480_s26  ;;  %s1733_s13 = sshll.u32 %s1477_s25, 3 }
  0x3f   : > { %1083 = dma.hbm_to_vmem [thread:$0]  (!%p1489_p0), %s1732_s28, 256, %s344_s27, %s331_s20, %s1349_s17, %s1349_s17, %s1350_s23  }
  0x40   : > { %s381_s2 = scalar_lea.vmem [#allocation8], %s1733_s13  ;;  %s1351_s14 = smov [#allocation8]  }
  0x41   : > { %s394_s9 = sshll.u32 %s381_s2, 4  ;;  %s1251_s24 = sshll.u32 %s1351_s14, 4  ;;  %s395_s9 = int_to_ptr.vmem [resolvable:$true] %s394_s9  ;;  %s1252_s24 = int_to_ptr.vmem [resolvable:$false] %s1251_s24 }
  0x42   : > { %s1246_s1 = scalar_lea.vmem %s395_s9, 128  ;;  %s1253_s22 = scalar_lea.vmem %s1252_s24, 256 }
  0x43   : > { %p1247_p4 = scmp.ne.s32.totalorder %s395_s9, %s1246_s1  ;;  %p1254_p7 = scmp.lt.s32.totalorder %s395_s9, %s1252_s24 }
  0x44   : > { %p1255_p10 = scmp.lt.s32.totalorder %s1253_s22, %s1246_s1 }
  0x45   : > { %p1249_p5 = pnand %p1247_p4, %p1179_p1 }
  0x46   : > { %p1256_p13 = por %p1255_p10, %p1254_p7 }
  0x47   : > { %p1250_p6 = pneg %p1249_p5 }
  0x49   : > { %p1257_p2 = pnand %p1256_p13, %p1250_p6 }
  0x4b   : > { %1260 = shalt.err (!%p1257_p2)
}
  0x4c   : > { %1089 = dma.hbm_to_vmem [thread:$0]  (!%p1489_p0), %s1521_s29, 128, %s395_s9, %s1500_s30  }
  0x4d   : > { %403 = sbr.rel (%p1512_p3) target bundleno = 887 (0x377), region = 56  ;;  %s1546_s2 = sand.u32 (!%p1512_p3), 1, %s1329_s10  }
  0x4e   : > { %s1018_s25 = sshll.u32 (!%p1512_p3), %s1546_s2, 4  ;;  %s406_s22 = scalar_lea.sflag (!%p1512_p3), [#allocation4], %s1546_s2 }
  0x4f   : > { %s409_s26 = scalar_lea.vmem (!%p1512_p3), [#allocation3], %s1018_s25 }
  0x52   : > { %1312 = dma.done.wait (%p1459_p8), %s406_s22, 256  }
  0x53   : > { %1314 = vsyncadd (%p1459_p8), %s406_s22, 4294967040  ;;  %s414_s9 = sand.u32 1, %s1439_s15   ;;  %s1019_s30 = sshll.u32 %s1546_s2, 3 }
  0x54   : > { %s415_s18 = scalar_lea.sflag [#allocation7], %s414_s9  ;;  %s418_s20 = scalar_lea.vmem [#allocation6], %s1019_s30 }
  0x55   : > { %1316 = dma.done.wait (%p1459_p8), %s415_s18, 256  }
  0x56   : > { %1318 = vsyncadd (%p1459_p8), %s415_s18, 4294967040  ;;  %vm487_vm0 = vcmask 261120   ;;  %v1562_v0 = vld [vmem:[%s409_s26 + $0x8] sm:$0xff]  ;;  %v1564_v1 = vld [vmem:[%s418_s20] sm:$0xff]  ;;  %s427_s11 = scalar_lea.vmem [#allocation8], %s1019_s30  ;;  %vm719_vm1 = vcmask 64512  }
  0x57   : > { %v1566_v2 = vld [vmem:[%s427_s11] sm:$0xff]  ;;  %v494_v3 = vsel %vm487_vm0, %v1562_v0, 0.0  ;;  %v488_v4 = vsel %vm487_vm0, %v1564_v1, 0.0  ;;  %v1572_v5 = vld [vmem:[%s409_s26] sm:$0xff]  ;;  %v500_v9 = vmul.f32 %v1564_v1, %v1564_v1  ;;  %v502_v13 = vmul.f32 %v1562_v0, %v1562_v0  ;;  %v1151_v16 = vld [vmem:[%s1697_s5 + $0x8] sm:$0xff]   ;;  %s1354_s1 = smov 120  }
  0x58   : > { %495 = vadd.xlane.f32.xlu1 %v494_v3  ;;  %489 = vadd.xlane.f32.xlu0 %v488_v4  ;;  %v497_v6 = vsel %vm487_vm0, %v1566_v2, 0.0  ;;  %v491_v7 = vsel %vm487_vm0, %v1572_v5, 0.0  ;;  %v501_v8 = vmul.f32 %v1572_v5, %v1572_v5  ;;  %v503_v12 = vmul.f32 %v1566_v2, %v1566_v2  ;;  %v1152_v17 = vld [vmem:[%s1697_s5] sm:$0xff]   ;;  %s471_s17 = scalar_lea.vmem [#allocation9], %s1018_s25  ;;  %s1050_s16 = sshll.u32 %s1337_s12, 8 }
  0x59   : > { %v504_v11 = vsel %vm487_vm0, %v500_v9, 0.0  ;;  %v510_v15 = vsel %vm487_vm0, %v502_v13, 0.0  ;;  %1058 = vmatprep.subr.bf16.mxu0 %v1151_v16  ;;  %v1022_v53 = vld [vmem:[%s1695_s3] ss:$0 sm:$0xff]  ;;  %vm807_vm2 = vcmask 1043456   ;;  %vm1353_vm3 = vmmov 0  }
  0x5a   : > { %v507_v10 = vsel %vm487_vm0, %v501_v8, 0.0  ;;  %v513_v14 = vsel %vm487_vm0, %v503_v12, 0.0  ;;  %1059 = vmatpush3.bf16.msra.mxu0 %v1151_v16  ;;  %v1023_v57 = vld [vmem:[%s1696_s4] ss:$0 sm:$0xff]  ;;  %s870_s23 = sshll.u32 %s471_s17, 4  ;;  %s1735_s13 = sld [smem:[#allocation23_spill]]  ;;  %s1638_s23 = int_to_ptr.vmem [resolvable:$true] %s870_s23 }
  0x5b   : > { %1060 = vmatprep.subr.bf16.mxu0 %v1152_v17  ;;  %s855_s25 = scalar_lea.sflag [#allocation5], %s1546_s2  ;;  %s1261_s12 = scalar_lea.vmem %s1638_s23, 256 }
  0x5c   : > { %498 = vadd.xlane.f32.xlu1 %v497_v6  ;;  %492 = vadd.xlane.f32.xlu0 %v491_v7  ;;  %p1262_p8 = scmp.ne.s32.totalorder %s1638_s23, %s1261_s12  ;;  %s1355_s24 = smov [#allocation9]  }
  0x5d   : > { %s1265_s22 = sshll.u32 %s1355_s24, 4  ;;  %s1266_s22 = int_to_ptr.vmem [resolvable:$false] %s1265_s22 }
  0x5e   : > { %1061 = vmatpush3.bf16.msra.mxu0 %v1152_v17  ;;  %p1263_p0 = pnand %p1262_p8, %p1463_p9  ;;  %s1267_s26 = scalar_lea.vmem %s1266_s22, 512 }
  0x5f   : > { %p1268_p3 = scmp.lt.s32.totalorder %s1638_s23, %s1266_s22  ;;  %p1269_p4 = scmp.lt.s32.totalorder %s1267_s26, %s1261_s12 }
  0x60   : > { %508 = vadd.xlane.f32.xlu1 %v507_v10  ;;  %505 = vadd.xlane.f32.xlu0 %v504_v11  ;;  %s1643_s14 = scalar_lea.hbm %s1735_s13, %s1050_s16  ;;  %p1264_p1 = pneg %p1263_p0 }
  0x61   : > { %p1270_p5 = por %p1269_p4, %p1268_p3 }
  0x63   : > { %p1271_p6 = pnand %p1270_p5, %p1264_p1 }
  0x64   : > { %514 = vadd.xlane.f32.xlu1 %v513_v14  ;;  %511 = vadd.xlane.f32.xlu0 %v510_v15 }
  0xe1   : > { %v496_v18 = vpop.xlane.xlu1 %495  ;;  %v490_v19 = vpop.xlane.xlu0 %489 }
  0xe2   : > { %v516_v22 = vmul.f32 0.03125, %v490_v19  ;;  %v518_v24 = vmul.f32 0.03125, %v496_v18  ;;  %v1352_v19 = vmov 0.0  }
  0xe3   : > { %720 = vst.msk [vmem:[#allocation2] sm:$0xff] %vm719_vm1, %v1352_v19  ;;  %723 = vst.msk [vmem:[#allocation2 + $0x18] sm:$0xff] %vm719_vm1, %v1352_v19  ;;  %1066 = vmatprep.subr.bf16.mxu1 %v1352_v19  ;;  %1068 = vmatprep.mubr.msk.bf16.mxu1 %vm1353_vm3, %v1352_v19 }
  0xe4   : > { %v524_v28 = vmul.f32 %v516_v22, %v516_v22  ;;  %v526_v34 = vmul.f32 %v518_v24, %v518_v24  ;;  %v544_v52 = vsub.f32 %v1564_v1, %v516_v22  ;;  %v546_v61 = vsub.f32 %v1562_v0, %v518_v24 }
  0xe5   : > { %v499_v20 = vpop.xlane.xlu1 %498  ;;  %v493_v21 = vpop.xlane.xlu0 %492 }
  0xe6   : > { %v517_v23 = vmul.f32 0.03125, %v493_v21  ;;  %v519_v25 = vmul.f32 0.03125, %v499_v20  ;;  %v803_v21 = vld [vmem:[%s1700_s8] sm:$0xf] }
  0xe7   : > { %v809_v22 = vsel %vm807_vm2, %v803_v21, 0 }
  0xe8   : > { %v525_v29 = vmul.f32 %v517_v23, %v517_v23  ;;  %v527_v35 = vmul.f32 %v519_v25, %v519_v25  ;;  %v545_v50 = vsub.f32 %v1572_v5, %v517_v23  ;;  %v547_v58 = vsub.f32 %v1566_v2, %v519_v25  ;;  %1067 = vmatpush3.bf16.msra.mxu1 %v809_v22 }
  0xe9   : > { %v509_v26 = vpop.xlane.xlu1 %508  ;;  %v506_v27 = vpop.xlane.xlu0 %505 }
  0xea   : > { %v521_v30 = vmul.f32 0.03125, %v509_v26  ;;  %v520_v31 = vmul.f32 0.03125, %v506_v27 }
  0xec   : > { %v529_v32 = vsub.f32 %v521_v30, %v525_v29  ;;  %v528_v33 = vsub.f32 %v520_v31, %v524_v28  ;;  %v1032_v29 = vld [vmem:[%s1698_s6] ss:$0 sm:$0xff]  ;;  %v1033_v30 = vld [vmem:[%s1698_s6 + $0x1] ss:$0 sm:$0xff]  ;;  %v1034_v31 = vld [vmem:[%s1698_s6 + $0x2] ss:$0 sm:$0xff] }
  0xed   : > { %v515_v36 = vpop.xlane.xlu1 %514  ;;  %v512_v37 = vpop.xlane.xlu0 %511 }
  0xee   : > { %v533_v38 = vmax.f32 %v529_v32, 0.0  ;;  %v532_v39 = vmax.f32 %v528_v33, 0.0  ;;  %v523_v40 = vmul.f32 0.03125, %v515_v36  ;;  %v522_v41 = vmul.f32 0.03125, %v512_v37 }
  0xf0   : > { %v537_v42 = vadd.f32 1e-05, %v533_v38  ;;  %v536_v43 = vadd.f32 1e-05, %v532_v39  ;;  %v531_v44 = vsub.f32 %v523_v40, %v527_v35  ;;  %v530_v45 = vsub.f32 %v522_v41, %v526_v34 }
  0xf2   : > { %1153 = vrsqrt.f32 %v537_v42  ;;  %v535_v46 = vmax.f32 %v531_v44, 0.0  ;;  %v534_v47 = vmax.f32 %v530_v45, 0.0 }
  0xf3   : > { %1155 = vrsqrt.f32 %v536_v43 }
  0xf4   : > { %v539_v48 = vadd.f32 1e-05, %v535_v46  ;;  %v538_v49 = vadd.f32 1e-05, %v534_v47  ;;  %v1035_v46 = vld [vmem:[%s1698_s6 + $0x3] ss:$0 sm:$0xff] }
  0xf6   : > { %1157 = vrsqrt.f32 %v539_v48 }
  0xf7   : > { %1159 = vrsqrt.f32 %v538_v49 }
  0xff   : > { %v1154_v51 = vpop.eup %1153 }
 0x100   : > { %v1156_v54 = vpop.eup %1155  ;;  %v549_v55 = vmul.f32 %v1154_v51, %v545_v50 }
 0x101   : > { %v548_v56 = vmul.f32 %v1156_v54, %v544_v52 }
 0x102   : > { %v560_v59 = vmul.f32 %v1022_v53, %v549_v55 }
 0x103   : > { %v1158_v60 = vpop.eup %1157  ;;  %v559_v62 = vmul.f32 %v1022_v53, %v548_v56 }
 0x104   : > { %v1160_v63 = vpop.eup %1159  ;;  %v571_v1 = vadd.f32 %v1023_v57, %v560_v59  ;;  %v551_v3 = vmul.f32 %v1158_v60, %v547_v58  ;;  %v1037_v60 = vld [vmem:[%s1699_s7] ss:$0 sm:$0xff] }
 0x105   : > { %v570_v4 = vadd.f32 %v1023_v57, %v559_v62  ;;  %v550_v5 = vmul.f32 %v1160_v63, %v546_v61 }
 0x106   : > { %v562_v6 = vmul.f32 %v1022_v53, %v551_v3 }
 0x107   : > { %v574_v7 = vpack.c.bf16 %v571_v1, %v570_v4  ;;  %v561_v8 = vmul.f32 %v1022_v53, %v550_v5  ;;  %v1036_v53 = vld [vmem:[%s1698_s6 + $0x4] ss:$0 sm:$0xff] }
 0x108   : > { %v573_v9 = vadd.f32 %v1023_v57, %v562_v6 }
 0x109   : > { %1062 = vmatprep.mubr.msk.bf16.mxu0 %vm487_vm0, %v574_v7  ;;  %v572_v10 = vadd.f32 %v1023_v57, %v561_v8 }
 0x10b   : > { %v575_v11 = vpack.c.bf16 %v573_v9, %v572_v10 }
 0x10d   : > { %1063 = vmatmul.mubr.msk.bf16.vlgmr.msra.gmra.mxu0 %vm487_vm0, %v575_v11 }
 0x1cd   : > { %v1064_v2 = vpop.f32.mrf.mxu0 }
 0x1ce   : > { %v1030_v12 = vmul.f32 -1.442695, %v1064_v2 }
 0x1cf   : > { %v632_v13 = vpop.f32.mrf.mxu0 }
 0x1d0   : > { %1161 = vpow2.f32 %v1030_v12 }
 0x1d1   : > { %v1065_v0 = vpop.f32.mrf.mxu0 }
 0x1d3   : > { %v635_v14 = vpop.f32.mrf.mxu0 }
 0x1d4   : > { %v1029_v15 = vmul.f32 -1.442695, %v635_v14 }
 0x1d6   : > { %1163 = vpow2.f32 %v1029_v15 }
 0x1dd   : > { %v1162_v16 = vpop.eup %1161 }
 0x1de   : > { %v661_v17 = vadd.f32 1.0, %v1162_v16 }
 0x1e0   : > { %1165 = vrcp.f32 %v661_v17 }
 0x1e3   : > { %v1164_v18 = vpop.eup %1163 }
 0x1e4   : > { %v660_v20 = vadd.f32 1.0, %v1164_v18 }
 0x1e6   : > { %1167 = vrcp.f32 %v660_v20 }
 0x1ed   : > { %v1166_v23 = vpop.eup %1165 }
 0x1ee   : > { %679 = vrot.lane.b32.xlu1 %v1166_v23, %s1354_s1 }
 0x1f3   : > { %v1168_v24 = vpop.eup %1167 }
 0x1f4   : > { %677 = vrot.lane.b32.xlu0 %v1168_v24, %s1354_s1  ;;  %s1736_s1 = smov %s1735_s13 }
 0x260   : > { %v680_v25 = vpop.permute.xlu1 %679 }
 0x261   : > { %v689_v26 = vmul.f32 %v1064_v2, %v680_v25 }
 0x263   : > { %722 = vst.msk [vmem:[#allocation2 + $0x10] sm:$0xff] %vm719_vm1, %v689_v26 }
 0x266   : > { %v678_v27 = vpop.permute.xlu0 %677 }
 0x267   : > { %v688_v28 = vmul.f32 %v678_v27, %v635_v14 }
 0x269   : > { %721 = vst.msk [vmem:[#allocation2 + $0x8] sm:$0xff] %vm719_vm1, %v688_v28 }
 0x26a   : > { %v747_v40 = vld [vmem:[#allocation2 + $0x10] sm:$0xff] }
 0x26b   : > { %v758_v45 = vld [vmem:[#allocation2 + $0x11] sm:$0xff]  ;;  %v754_v48 = vmul.f32 %v1034_v31, %v747_v40 }
 0x26c   : > { %v769_v52 = vld [vmem:[#allocation2 + $0x12] sm:$0xff]  ;;  %v765_v55 = vmul.f32 %v1035_v46, %v758_v45 }
 0x26d   : > { %v776_v59 = vmul.f32 %v1036_v53, %v769_v52 }
 0x270   : > { %v724_v32 = vld [vmem:[#allocation2 + $0x6] sm:$0xff]  ;;  %v725_v33 = vld [vmem:[#allocation2 + $0xe] sm:$0xff] }
 0x271   : > { %v735_v34 = vld [vmem:[#allocation2 + $0x7] sm:$0xff]  ;;  %v731_v35 = vmul.f32 %v1032_v29, %v724_v32  ;;  %v732_v36 = vmul.f32 %v1032_v29, %v725_v33  ;;  %v736_v37 = vld [vmem:[#allocation2 + $0xf] sm:$0xff] }
 0x272   : > { %v742_v38 = vmul.f32 %v1033_v30, %v735_v34  ;;  %v746_v39 = vld [vmem:[#allocation2 + $0x8] sm:$0xff]  ;;  %v743_v41 = vmul.f32 %v1033_v30, %v736_v37 }
 0x273   : > { %v757_v42 = vld [vmem:[#allocation2 + $0x9] sm:$0xff]  ;;  %v753_v44 = vmul.f32 %v1034_v31, %v746_v39 }
 0x274   : > { %v744_v43 = vadd.f32 %v742_v38, %v731_v35  ;;  %v745_v47 = vadd.f32 %v743_v41, %v732_v36  ;;  %v768_v49 = vld [vmem:[#allocation2 + $0xa] sm:$0xff]  ;;  %v764_v51 = vmul.f32 %v1035_v46, %v757_v42 }
 0x275   : > { %v775_v57 = vmul.f32 %v1036_v53, %v768_v49 }
 0x276   : > { %v755_v50 = vadd.f32 %v753_v44, %v744_v43  ;;  %v756_v54 = vadd.f32 %v754_v48, %v745_v47 }
 0x278   : > { %v766_v56 = vadd.f32 %v764_v51, %v755_v50  ;;  %v767_v58 = vadd.f32 %v765_v55, %v756_v54 }
 0x27a   : > { %v777_v61 = vadd.f32 %v775_v57, %v766_v56  ;;  %v778_v62 = vadd.f32 %v776_v59, %v767_v58 }
 0x27c   : > { %v786_v63 = vadd.f32 %v1037_v60, %v777_v61  ;;  %v787_v1 = vadd.f32 %v1037_v60, %v778_v62 }
 0x27e   : > { %v1038_v3 = vmul.f32 -1.442695, %v786_v63  ;;  %v1039_v4 = vmul.f32 -1.442695, %v787_v1 }
 0x280   : > { %1169 = vpow2.f32 %v1038_v3 }
 0x281   : > { %1171 = vpow2.f32 %v1039_v4 }
 0x28d   : > { %v1170_v5 = vpop.eup %1169 }
 0x28e   : > { %v1172_v6 = vpop.eup %1171  ;;  %v794_v7 = vadd.f32 1.0, %v1170_v5 }
 0x28f   : > { %v795_v8 = vadd.f32 1.0, %v1172_v6 }
 0x290   : > { %1173 = vrcp.f32 %v794_v7 }
 0x291   : > { %1175 = vrcp.f32 %v795_v8 }
 0x29d   : > { %v1174_v9 = vpop.eup %1173 }
 0x29e   : > { %v1176_v10 = vpop.eup %1175  ;;  %v800_v11 = vmul.f32 %v1174_v9, %v786_v63 }
 0x29f   : > { %v801_v2 = vmul.f32 %v1176_v10, %v787_v1 }
 0x2a1   : > { %v802_v12 = vpack.c.bf16 %v801_v2, %v800_v11 }
 0x2a3   : > { %1069 = vmatmul.mubr.msk.bf16.vlgmr.msra.gmra.mxu1 %vm719_vm1, %v802_v12 }
 0x363   : > { %v845_v13 = vpop.f32.mrf.mxu1 }
 0x364   : > { %852 = vst.msk [vmem:[%s471_s17] sm:$0xff] %vm487_vm0, %v845_v13 }
 0x365   : > { %v1070_v0 = vpop.f32.mrf.mxu1 }
 0x367   : > { %v848_v14 = vpop.f32.mrf.mxu1 }
 0x368   : > { %853 = vst.msk [vmem:[%s471_s17 + $0x8] sm:$0xff] %vm487_vm0, %v848_v14 }
 0x369   : > { %v1071_v15 = vpop.f32.mrf.mxu1 }
 0x36a   : > { %1274 = shalt.err (!%p1271_p6)
}
 0x36b   : > { %s1275_s9 = scalar_lea.hbm %s1643_s14, 256  ;;  %s1279_s20 = scalar_lea.hbm %s1736_s1, 512 }
 0x36c   : > { %p1276_p7 = scmp.ne.s32.totalorder %s1643_s14, %s1275_s9  ;;  %p1280_p2 = scmp.lt.s32.totalorder %s1643_s14, %s1736_s1 }
 0x36d   : > { %p1281_p8 = scmp.lt.s32.totalorder %s1279_s20, %s1275_s9 }
 0x36e   : > { %p1277_p10 = pnand %p1276_p7, %p1463_p9 }
 0x36f   : > { %p1282_p0 = por %p1281_p8, %p1280_p2 }
 0x370   : > { %p1278_p13 = pneg %p1277_p10 }
 0x372   : > { %p1283_p1 = pnand %p1282_p0, %p1278_p13 }
 0x374   : > { %1286 = shalt.err (!%p1283_p1)
}
 0x375   : > { %s1356_s21 = smov 128   ;;  %s1357_s27 = smov 8  }
 0x376   : > { %1078 = dma.vmem_to_hbm [thread:$0]  (%p1463_p9), %s1638_s23, 256, %s1643_s14, %s855_s25, %s1356_s21, %s1356_s21, %s1357_s27  }
 0x377 PF: > { %s1737_s17 = sld [smem:[#allocation13_spill]]  ;;  %p1091_p3 = pnand %p1007_p12, %p1470_p11 }
 0x378   : > { %s1739_s19 = sld [smem:[#allocation16_spill]] }
 0x379   : > { %p1092_p4 = pneg %p1091_p3 }
 0x37d   : > { %s885_s28 = sand.u32 1, %s1737_s17  }
 0x37e   : > { %s886_s13 = scalar_lea.sflag [#allocation5], %s885_s28 }
 0x37f   : > { %1320 = dma.done.wait (%p1092_p4), %s886_s13, 256  }
 0x380   : > { %1322 = vsyncadd (%p1092_p4), %s886_s13, 4294967040  ;;  %s28_s14 = sadd.s32 1, %s1739_s19   ;;  %s1740_s12 = sld [smem:[#allocation14_spill]] }
 0x381   : > { %p25_p5 = scmp.ge.s32.totalorder %s28_s14, 4   ;;  %s1741_s11 = sld [smem:[#allocation19_spill]] }
 0x382   : > { %s1742_s2 = sld [smem:[#allocation15_spill]]  ;;  %s1744_s30 = smov %s1329_s10 }
 0x383   : > { %s1743_s13 = sld [smem:[#allocation17_spill]] }
 0x384   :  { %27 = sbr.rel (!%p25_p5) target bundleno = 12 (0xc), region = 125 }
 0x386   : > { %s1745_s10 = smov %s1740_s12 }
 0x388   : > { %s1746_s12 = smov %s1742_s2 }
 0x389   :  { %891 = vsyncpa [#allocation4], 1 }
 0x38a   :  { %893 = vsyncpa [#allocation4 + $0x1], 1 }
 0x38b   :  { %894 = vsyncpa [#allocation7], 1 }
 0x38c   :  { %896 = vsyncpa [#allocation7 + $0x1], 1 }
 0x38d   :  { %897 = vsyncpa [#allocation5], 1 }
 0x38e   :  { %899 = vsyncpa [#allocation5 + $0x1], 1 }

</bundles_post_ra>
